<compile_context>
chip_gen: v7x
topology: tpu7x:2x2x1
jax: 0.10.0
libtpu: 0.0.40
codegen_flags: <defaults>
</compile_context>

<pallas_src>
import jax
import jax.numpy as jnp
from jax.experimental import pallas as pl
from jax.experimental.pallas import tpu as pltpu

_LANE = 128
_SUBLANE = 8
# Rows are rounded to a multiple of 32 so the block tiling is legal for any
# input dtype down to int8/fp8 (min tile (32, 128)); harmless extra padding.
_ROW_ALIGN = 32
_MAX_BLOCK_ROWS = 2048  # 2048*128*4B = 1 MiB per f32 block per input


def _cdiv(a, b):
    return -(-a // b)


def _dice_partials_kernel(p_ref, t_ref, acc_ref):
    """Accumulates (intersection, preds.sum, targets.sum) partials per split.

    acc_ref is the (1, 3, 8, 128) output block; it stays resident across the
    inner ("arbitrary") grid axis and acts as a vreg-shaped accumulator.
    """
    i = pl.program_id(1)

    @pl.when(i == 0)
    def _init():
        acc_ref[...] = jnp.zeros_like(acc_ref)

    p = jax.nn.sigmoid(p_ref[...].astype(jnp.float32))
    t = t_ref[...].astype(jnp.float32)

    def fold(x):
        # (block_rows, 128) -> (block_rows//8, 8, 128); reducing axis 0 is pure
        # elementwise vreg adds (VPU), no cross-lane XLU work per step.
        return jnp.sum(x.reshape(-1, _SUBLANE, _LANE), axis=0)

    acc_ref[0, 0] += fold(p * t)  # intersection
    acc_ref[0, 1] += fold(p)      # preds.sum()  (padding adds sigmoid(0)=0.5 each)
    acc_ref[0, 2] += fold(t)      # targets.sum() (padding adds exactly 0)


def dice_loss(preds, targets, smooth=1e-6):
    """Pallas TPU implementation of DiceLoss.forward."""
    n = preds.size
    assert targets.size == n, "preds and targets must have the same number of elements"

    rows = _cdiv(n, _LANE)
    rows_al = _cdiv(rows, _ROW_ALIGN) * _ROW_ALIGN

    if rows_al <= _MAX_BLOCK_ROWS:
        num_splits = 1
        block_rows = rows_al
        blocks_per_split = 1
    else:
        num_splits = 2  # use both TensorCores on v7x; sequential elsewhere
        block_rows = _MAX_BLOCK_ROWS
        blocks_per_split = _cdiv(rows_al, num_splits * block_rows)

    padded_rows = num_splits * blocks_per_split * block_rows
    pad = padded_rows * _LANE - n  # static Python int

    p_flat = preds.reshape(-1)
    t_flat = targets.reshape(-1)
    if pad:
        p_flat = jnp.pad(p_flat, (0, pad))
        t_flat = jnp.pad(t_flat, (0, pad))
    p2 = p_flat.reshape(padded_rows, _LANE)
    t2 = t_flat.reshape(padded_rows, _LANE)

    in_spec = pl.BlockSpec(
        (block_rows, _LANE),
        lambda c, i: (c * blocks_per_split + i, 0),
    )
    out_spec = pl.BlockSpec(
        (1, 3, _SUBLANE, _LANE),
        lambda c, i: (c, 0, 0, 0),
    )

    partials = pl.pallas_call(
        _dice_partials_kernel,
        out_shape=jax.ShapeDtypeStruct(
            (num_splits, 3, _SUBLANE, _LANE), jnp.float32
        ),
        grid_spec=pltpu.PrefetchScalarGridSpec(
            num_scalar_prefetch=0,
            grid=(num_splits, blocks_per_split),
            in_specs=[in_spec, in_spec],
            out_specs=out_spec,
        ),
        compiler_params=pltpu.CompilerParams(
            dimension_semantics=("parallel", "arbitrary"),
        ),
    )(p2, t2)

    # Tiny final reduction + dice ratio on (num_splits, 3, 8, 128) partials.
    sums = jnp.sum(partials, axis=(0, 2, 3))
    inter = sums[0]
    # Padding correction: each padded pred element is 0 -> sigmoid(0) == 0.5
    # exactly in f32, so preds.sum() over-counts by 0.5 * pad.
    psum = sums[1] - 0.5 * pad
    tsum = sums[2]
    dice = (2.0 * inter + smooth) / (psum + tsum + smooth)
    return (1.0 - dice).astype(jnp.float32)


def _dice_loss_ref(preds, targets, smooth=1e-6):
    p = jax.nn.sigmoid(preds.astype(jnp.float32)).reshape(-1)
    t = targets.astype(jnp.float32).reshape(-1)
    inter = jnp.sum(p * t)
    dice = (2.0 * inter + smooth) / (jnp.sum(p) + jnp.sum(t) + smooth)
    return 1.0 - dice


if __name__ == "__main__":
    key = jax.random.PRNGKey(0)
    k1, k2, k3, k4, k5, k6 = jax.random.split(key, 6)

    # Primary: small segmentation-style logits / binary targets (NCHW).
    preds = jax.random.normal(k1, (2, 4, 16, 16), dtype=jnp.float32)
    targets = (jax.random.uniform(k2, (2, 4, 16, 16)) > 0.5).astype(jnp.float32)
    loss = jax.block_until_ready(dice_loss(preds, targets))
    ref = _dice_loss_ref(preds, targets)
    assert jnp.allclose(loss, ref, atol=1e-4, rtol=1e-4), (loss, ref)

    # Ragged size: exercises the analytic sigmoid(0)=0.5 padding correction.
    preds2 = jax.random.normal(k3, (3, 5, 7, 11), dtype=jnp.float32)
    targets2 = (jax.random.uniform(k4, (3, 5, 7, 11)) > 0.5).astype(jnp.float32)
    loss2 = jax.block_until_ready(dice_loss(preds2, targets2))
    ref2 = _dice_loss_ref(preds2, targets2)
    assert jnp.allclose(loss2, ref2, atol=1e-4, rtol=1e-4), (loss2, ref2)

    # Larger input: exercises multi-block streaming + the 2-way core split.
    preds3 = jax.random.normal(k5, (2, 4, 512, 512), dtype=jnp.float32)
    targets3 = (jax.random.uniform(k6, (2, 4, 512, 512)) > 0.5).astype(jnp.float32)
    loss3 = jax.block_until_ready(dice_loss(preds3, targets3))
    ref3 = _dice_loss_ref(preds3, targets3)
    assert jnp.allclose(loss3, ref3, atol=1e-4, rtol=1e-4), (loss3, ref3)

    print("KERNEL_OK")
</pallas_src>

<mosaic_0001>
module attributes {stable_mosaic.version = 11 : i64} {
  func.func @_dice_partials_kernel(%arg0: i32, %arg1: i32, %arg2: memref<32x128xf32, #tpu.memory_space<vmem>>, %arg3: memref<32x128xf32, #tpu.memory_space<vmem>>, %arg4: memref<1x3x8x128xf32, #tpu.memory_space<vmem>>) attributes {dimension_semantics = [#tpu.dimension_semantics<parallel>, #tpu.dimension_semantics<arbitrary>], iteration_bounds = array<i64: 1, 1>, scalar_prefetch = 0 : i64, scratch_operands = 0 : i64, tpu.core_type = #tpu.core_type<tc>, window_params = [{transform_indices = @transform_0, window_bounds = array<i64: 32, 128>}, {transform_indices = @transform_1, window_bounds = array<i64: 32, 128>}, {transform_indices = @transform_2, window_bounds = array<i64: 1, 3, 8, 128>}]} {
    %c0_i32 = arith.constant 0 : i32
    %0 = arith.cmpi eq, %arg1, %c0_i32 : i32
    %1 = arith.extui %0 : i1 to i32
    %c0_i32_0 = arith.constant 0 : i32
    %2 = arith.cmpi ne, %1, %c0_i32_0 : i32
    scf.if %2 {
      %cst_29 = arith.constant 0.000000e+00 : f32
      %35 = vector.broadcast %cst_29 : f32 to vector<1x3x8x128xf32>
      %c0_30 = arith.constant 0 : index
      %c0_31 = arith.constant 0 : index
      %c0_32 = arith.constant 0 : index
      %c0_33 = arith.constant 0 : index
      %36 = vector.load %arg4[%c0_30, %c0_31, %c0_32, %c0_33] : memref<1x3x8x128xf32, #tpu.memory_space<vmem>>, vector<1x3x8x128xf32>
      tpu.vector_store %arg4[%c0_30, %c0_31, %c0_32, %c0_33], %35 {strides = array<i32>} : memref<1x3x8x128xf32, #tpu.memory_space<vmem>>, vector<1x3x8x128xf32>,
    } else {
    }
    %c0 = arith.constant 0 : index
    %c0_1 = arith.constant 0 : index
    %3 = vector.load %arg2[%c0, %c0_1] : memref<32x128xf32, #tpu.memory_space<vmem>>, vector<32x128xf32>
    %4 = arith.negf %3 : vector<32x128xf32>
    %5 = math.exp %4 : vector<32x128xf32>
    %cst = arith.constant 1.000000e+00 : f32
    %6 = vector.broadcast %cst : f32 to vector<32x128xf32>
    %7 = arith.addf %6, %5 : vector<32x128xf32>
    %8 = arith.divf %6, %7 : vector<32x128xf32>
    %c0_2 = arith.constant 0 : index
    %c0_3 = arith.constant 0 : index
    %9 = vector.load %arg3[%c0_2, %c0_3] : memref<32x128xf32, #tpu.memory_space<vmem>>, vector<32x128xf32>
    %c0_4 = arith.constant 0 : index
    %c0_5 = arith.constant 0 : index
    %c0_6 = arith.constant 0 : index
    %c0_7 = arith.constant 0 : index
    %10 = vector.load %arg4[%c0_4, %c0_5, %c0_6, %c0_7] : memref<1x3x8x128xf32, #tpu.memory_space<vmem>>, vector<1x1x8x128xf32>
    %11 = vector.shape_cast %10 : vector<1x1x8x128xf32> to vector<8x128xf32>
    %12 = arith.mulf %8, %9 : vector<32x128xf32>
    %13 = vector.shape_cast %12 : vector<32x128xf32> to vector<4x8x128xf32>
    %cst_8 = arith.constant dense<0.000000e+00> : vector<8x128xf32>
    %14 = vector.multi_reduction <add>, %13, %cst_8 [0] : vector<4x8x128xf32> to vector<8x128xf32>
    %15 = arith.addf %11, %14 : vector<8x128xf32>
    %c0_9 = arith.constant 0 : index
    %c0_10 = arith.constant 0 : index
    %c0_11 = arith.constant 0 : index
    %c0_12 = arith.constant 0 : index
    %16 = vector.load %arg4[%c0_9, %c0_10, %c0_11, %c0_12] : memref<1x3x8x128xf32, #tpu.memory_space<vmem>>, vector<1x1x8x128xf32>
    %17 = vector.shape_cast %16 : vector<1x1x8x128xf32> to vector<8x128xf32>
    %18 = vector.shape_cast %15 : vector<8x128xf32> to vector<1x1x8x128xf32>
    tpu.vector_store %arg4[%c0_9, %c0_10, %c0_11, %c0_12], %18 {strides = array<i32>} : memref<1x3x8x128xf32, #tpu.memory_space<vmem>>, vector<1x1x8x128xf32>,
    %c0_13 = arith.constant 0 : index
    %c1 = arith.constant 1 : index
    %c0_14 = arith.constant 0 : index
    %c0_15 = arith.constant 0 : index
    %19 = vector.load %arg4[%c0_13, %c1, %c0_14, %c0_15] : memref<1x3x8x128xf32, #tpu.memory_space<vmem>>, vector<1x1x8x128xf32>
    %20 = vector.shape_cast %19 : vector<1x1x8x128xf32> to vector<8x128xf32>
    %21 = vector.shape_cast %8 : vector<32x128xf32> to vector<4x8x128xf32>
    %cst_16 = arith.constant dense<0.000000e+00> : vector<8x128xf32>
    %22 = vector.multi_reduction <add>, %21, %cst_16 [0] : vector<4x8x128xf32> to vector<8x128xf32>
    %23 = arith.addf %20, %22 : vector<8x128xf32>
    %c0_17 = arith.constant 0 : index
    %c1_18 = arith.constant 1 : index
    %c0_19 = arith.constant 0 : index
    %c0_20 = arith.constant 0 : index
    %24 = vector.load %arg4[%c0_17, %c1_18, %c0_19, %c0_20] : memref<1x3x8x128xf32, #tpu.memory_space<vmem>>, vector<1x1x8x128xf32>
    %25 = vector.shape_cast %24 : vector<1x1x8x128xf32> to vector<8x128xf32>
    %26 = vector.shape_cast %23 : vector<8x128xf32> to vector<1x1x8x128xf32>
    tpu.vector_store %arg4[%c0_17, %c1_18, %c0_19, %c0_20], %26 {strides = array<i32>} : memref<1x3x8x128xf32, #tpu.memory_space<vmem>>, vector<1x1x8x128xf32>,
    %c0_21 = arith.constant 0 : index
    %c2 = arith.constant 2 : index
    %c0_22 = arith.constant 0 : index
    %c0_23 = arith.constant 0 : index
    %27 = vector.load %arg4[%c0_21, %c2, %c0_22, %c0_23] : memref<1x3x8x128xf32, #tpu.memory_space<vmem>>, vector<1x1x8x128xf32>
    %28 = vector.shape_cast %27 : vector<1x1x8x128xf32> to vector<8x128xf32>
    %29 = vector.shape_cast %9 : vector<32x128xf32> to vector<4x8x128xf32>
    %cst_24 = arith.constant dense<0.000000e+00> : vector<8x128xf32>
    %30 = vector.multi_reduction <add>, %29, %cst_24 [0] : vector<4x8x128xf32> to vector<8x128xf32>
    %31 = arith.addf %28, %30 : vector<8x128xf32>
    %c0_25 = arith.constant 0 : index
    %c2_26 = arith.constant 2 : index
    %c0_27 = arith.constant 0 : index
    %c0_28 = arith.constant 0 : index
    %32 = vector.load %arg4[%c0_25, %c2_26, %c0_27, %c0_28] : memref<1x3x8x128xf32, #tpu.memory_space<vmem>>, vector<1x1x8x128xf32>
    %33 = vector.shape_cast %32 : vector<1x1x8x128xf32> to vector<8x128xf32>
    %34 = vector.shape_cast %31 : vector<8x128xf32> to vector<1x1x8x128xf32>
    tpu.vector_store %arg4[%c0_25, %c2_26, %c0_27, %c0_28], %34 {strides = array<i32>} : memref<1x3x8x128xf32, #tpu.memory_space<vmem>>, vector<1x1x8x128xf32>,
    return
  }
  func.func @transform_0(%arg0: i32, %arg1: i32) -> (i32, i32) {
    %c1_i32 = arith.constant 1 : i32
    %0 = arith.muli %arg0, %c1_i32 : i32
    %1 = arith.addi %0, %arg1 : i32
    %c0_i32 = arith.constant 0 : i32
    %c0_i32_0 = arith.constant 0 : i32
    return %1, %c0_i32 : i32, i32
  }
  func.func @transform_1(%arg0: i32, %arg1: i32) -> (i32, i32) {
    %c1_i32 = arith.constant 1 : i32
    %0 = arith.muli %arg0, %c1_i32 : i32
    %1 = arith.addi %0, %arg1 : i32
    %c0_i32 = arith.constant 0 : i32
    %c0_i32_0 = arith.constant 0 : i32
    return %1, %c0_i32 : i32, i32
  }
  func.func @transform_2(%arg0: i32, %arg1: i32) -> (i32, i32, i32, i32) {
    %c0_i32 = arith.constant 0 : i32
    %c0_i32_0 = arith.constant 0 : i32
    %c0_i32_1 = arith.constant 0 : i32
    %c0_i32_2 = arith.constant 0 : i32
    return %arg0, %c0_i32, %c0_i32_0, %c0_i32_1 : i32, i32, i32, i32
  }
}

</mosaic_0001>

<bundles_post_ra>
// kernel: tpu_custom_call.1
= control target key start
LH: loop header
LB: loop body
LE: loop exit
PB: predicated region body
PF: predicated region fallthrough
CT: control target
= control target key end

     0   :  { %7 = vsyncpa [#allocation3], 0  ;;  %s296_s0 = inlined_call_operand.hbm [shape: f32[32,128], index: 0, kind: input, shape index: {}]   ;;  %s297_s1 = inlined_call_operand.hbm [shape: f32[32,128], index: 1, kind: input, shape index: {}]   ;;  %s298_s2 = inlined_call_operand.hbm [shape: f32[1,3,8,128], index: 2, kind: output, shape index: {}]  }
   0x1   :  { %8 = vsyncpa [#allocation6], 0 }
   0x2   :  { %9 = vsyncpa [#allocation4], 0  ;;  %s231_s9 = smov [#allocation2]   ;;  %s159_s13 = scalar_lea.hbm %s296_s0, 512 }
   0x3   :  { %s19_s10 = sshll.u32 %s231_s9, 4  ;;  %p160_p0 = scmp.ne.s32.totalorder %s296_s0, %s159_s13  ;;  %s20_s10 = int_to_ptr.vmem [resolvable:$true] %s19_s10 }
   0x4   :  { %p163_p1 = scmp.lt.u32.totalorder %s159_s13, %s296_s0 }
   0x6   :  { %p165_p2 = pnand %p163_p1, %p160_p0 }
   0x8   :  { %168 = shalt.err (!%p165_p2)
}
   0x9   :  { %s169_s18 = scalar_lea.vmem %s20_s10, 512  ;;  %p174_p4 = scmp.lt.s32.totalorder %s20_s10, %s20_s10 }
   0xa   :  { %p170_p3 = scmp.ne.s32.totalorder %s20_s10, %s169_s18  ;;  %p175_p5 = scmp.lt.s32.totalorder %s169_s18, %s169_s18 }
   0xc   :  { %p176_p6 = por %p175_p5, %p174_p4 }
   0xe   :  { %p177_p7 = pnand %p176_p6, %p170_p3 }
  0x10   :  { %180 = shalt.err (!%p177_p7)
}
  0x11   :  { %s232_s19 = smov 128   ;;  %s233_s20 = smov 8  }
  0x12   :  { %25 = dma.hbm_to_vmem [thread:$0]  %s296_s0, 512, %s20_s10, [#allocation3], %s232_s19, %s232_s19, %s233_s20  }
  0x13   :  { %s234_s23 = smov [#allocation5]   ;;  %s181_s27 = scalar_lea.hbm %s297_s1, 512 }
  0x14   :  { %s35_s24 = sshll.u32 %s234_s23, 4  ;;  %p182_p8 = scmp.ne.s32.totalorder %s297_s1, %s181_s27  ;;  %s36_s24 = int_to_ptr.vmem [resolvable:$true] %s35_s24 }
  0x15   :  { %p185_p9 = scmp.lt.u32.totalorder %s181_s27, %s297_s1 }
  0x17   :  { %p187_p10 = pnand %p185_p9, %p182_p8 }
  0x19   :  { %190 = shalt.err (!%p187_p10)
}
  0x1a   :  { %s191_s4 = scalar_lea.vmem %s36_s24, 512  ;;  %p196_p12 = scmp.lt.s32.totalorder %s36_s24, %s36_s24 }
  0x1b   :  { %p192_p11 = scmp.ne.s32.totalorder %s36_s24, %s191_s4  ;;  %p197_p13 = scmp.lt.s32.totalorder %s191_s4, %s191_s4 }
  0x1d   :  { %p198_p0 = por %p197_p13, %p196_p12 }
  0x1f   :  { %p199_p1 = pnand %p198_p0, %p192_p11 }
  0x21   :  { %202 = shalt.err (!%p199_p1)
}
  0x22   :  { %41 = dma.hbm_to_vmem [thread:$0]  %s297_s1, 512, %s36_s24, [#allocation6], %s232_s19, %s232_s19, %s233_s20  }
  0x23   :  { %225 = dma.done.wait [#allocation3], 512  }
  0x24   :  { %226 = vsyncadd [#allocation3], 4294966784 }
  0x25   :  { %227 = dma.done.wait [#allocation6], 512  }
  0x26   :  { %228 = vsyncadd [#allocation6], 4294966784  ;;  %v59_v0 = vld [vmem:[#allocation2] sm:$0xff]  ;;  %v60_v1 = vld [vmem:[#allocation2 + $0x8] sm:$0xff]  ;;  %s235_s1 = smov [#allocation7]  }
  0x27   :  { %v61_v2 = vld [vmem:[#allocation2 + $0x10] sm:$0xff]  ;;  %v62_v3 = vld [vmem:[#allocation2 + $0x18] sm:$0xff]  ;;  %v133_v4 = vmul.f32 -1.442695, %v59_v0  ;;  %v134_v5 = vmul.f32 -1.442695, %v60_v1 }
  0x28   :  { %v135_v6 = vmul.f32 -1.442695, %v61_v2  ;;  %v136_v7 = vmul.f32 -1.442695, %v62_v3  ;;  %v87_v8 = vld [vmem:[#allocation5] sm:$0xff]  ;;  %v88_v9 = vld [vmem:[#allocation5 + $0x8] sm:$0xff] }
  0x29   :  { %143 = vpow2.f32 %v133_v4  ;;  %v110_v10 = vadd.f32 %v88_v9, %v87_v8  ;;  %v89_v11 = vld [vmem:[#allocation5 + $0x10] sm:$0xff]  ;;  %v90_v13 = vld [vmem:[#allocation5 + $0x18] sm:$0xff]  ;;  %s120_s6 = sshll.u32 %s235_s1, 4  ;;  %s121_s6 = int_to_ptr.vmem [resolvable:$true] %s120_s6 }
  0x2a   :  { %145 = vpow2.f32 %v134_v5  ;;  %s203_s7 = scalar_lea.vmem %s121_s6, 384  ;;  %p208_p3 = scmp.lt.s32.totalorder %s121_s6, %s121_s6 }
  0x2b   :  { %147 = vpow2.f32 %v135_v6  ;;  %v111_v12 = vadd.f32 %v110_v10, %v89_v11  ;;  %p204_p2 = scmp.ne.s32.totalorder %s121_s6, %s203_s7  ;;  %p209_p4 = scmp.lt.s32.totalorder %s203_s7, %s203_s7 }
  0x2c   :  { %149 = vpow2.f32 %v136_v7 }
  0x2d   :  { %v112_v14 = vadd.f32 %v111_v12, %v90_v13  ;;  %p210_p5 = por %p209_p4, %p208_p3 }
  0x2f   :  { %114 = vst [vmem:[#allocation7 + $0x10] sm:$0xff] %v112_v14  ;;  %p211_p6 = pnand %p210_p5, %p204_p2 }
  0x33   :  { %v144_v15 = vpop.eup %143 }
  0x34   :  { %v146_v16 = vpop.eup %145  ;;  %v75_v17 = vadd.f32 1.0, %v144_v15 }
  0x35   :  { %v148_v18 = vpop.eup %147  ;;  %v76_v19 = vadd.f32 1.0, %v146_v16 }
  0x36   :  { %v150_v20 = vpop.eup %149  ;;  %v77_v21 = vadd.f32 1.0, %v148_v18  ;;  %151 = vrcp.f32 %v75_v17 }
  0x37   :  { %v78_v22 = vadd.f32 1.0, %v150_v20  ;;  %153 = vrcp.f32 %v76_v19 }
  0x38   :  { %155 = vrcp.f32 %v77_v21 }
  0x39   :  { %157 = vrcp.f32 %v78_v22 }
  0x40   :  { %v152_v23 = vpop.eup %151 }
  0x41   :  { %v154_v24 = vpop.eup %153  ;;  %v92_v25 = vmul.f32 %v152_v23, %v87_v8 }
  0x42   :  { %v156_v26 = vpop.eup %155  ;;  %v93_v27 = vmul.f32 %v154_v24, %v88_v9  ;;  %v103_v28 = vadd.f32 %v154_v24, %v152_v23 }
  0x43   :  { %v158_v29 = vpop.eup %157  ;;  %v94_v30 = vmul.f32 %v156_v26, %v89_v11 }
  0x44   :  { %v95_v31 = vmul.f32 %v158_v29, %v90_v13  ;;  %v96_v32 = vadd.f32 %v93_v27, %v92_v25  ;;  %v104_v33 = vadd.f32 %v156_v26, %v103_v28 }
  0x46   :  { %v97_v34 = vadd.f32 %v96_v32, %v94_v30  ;;  %v105_v35 = vadd.f32 %v158_v29, %v104_v33 }
  0x48   :  { %v98_v36 = vadd.f32 %v97_v34, %v95_v31  ;;  %107 = vst [vmem:[#allocation7 + $0x8] sm:$0xff] %v105_v35 }
  0x4a   :  { %100 = vst [vmem:[#allocation7] sm:$0xff] %v98_v36 }
  0x4b   :  { %214 = shalt.err (!%p211_p6)
}
  0x4c   :  { %s215_s10 = scalar_lea.hbm %s298_s2, 384 }
  0x4d   :  { %p216_p7 = scmp.ne.s32.totalorder %s298_s2, %s215_s10  ;;  %p219_p8 = scmp.lt.u32.totalorder %s215_s10, %s298_s2 }
  0x4f   :  { %p221_p9 = pnand %p219_p8, %p216_p7 }
  0x51   :  { %224 = shalt.err (!%p221_p9)
}
  0x52   :  { %126 = dma.vmem_to_hbm [thread:$0]  %s121_s6, 384, %s298_s2, [#allocation4], %s232_s19, %s232_s19, %s233_s20  }
  0x53   :  { %229 = dma.done.wait [#allocation4], 384  }
  0x54   :  { %230 = vsyncadd [#allocation4], 4294966912 }
  0x55   :  { %130 = vsyncpa [#allocation3], 1 }
  0x56   :  { %131 = vsyncpa [#allocation6], 1 }
  0x57   :  { %132 = vsyncpa [#allocation4], 1 }

</bundles_post_ra>
